<compile_context>
chip_gen: v7x
topology: tpu7x:2x2x1
jax: 0.10.0
libtpu: 0.0.40
codegen_flags: <defaults>
</compile_context>

<pallas_src>
import functools

import jax
import jax.numpy as jnp
from jax.experimental import pallas as pl
from jax.experimental.pallas import tpu as pltpu


def _rnn_seq_kernel(xs_ref, h0_ref, w1h_ref, w1o_ref, w2h_ref, w2o_ref,
                    bh_ref, bo_ref, out_ref, hfin_ref, *, T, B):
    """Single kernel invocation runs all T timesteps.

    xs_ref:   (T*B, I)     all inputs, time-major rows (loaded once)
    h0_ref:   (B, H)       initial hidden state
    w1h_ref:  (I, H)       input  -> hidden weights
    w1o_ref:  (I, Opad)    input  -> output weights (lane-padded to 128)
    w2h_ref:  (H, H)       hidden -> hidden weights
    w2o_ref:  (H, Opad)    hidden -> output weights (lane-padded)
    bh_ref:   (1, H)       hidden bias
    bo_ref:   (1, Opad)    output bias (lane-padded)
    out_ref:  (T, B, Opad) per-step outputs (lane-dense stores)
    hfin_ref: (B, H)       final hidden state
    """
    w1h = w1h_ref[...]
    w1o = w1o_ref[...]
    w2h = w2h_ref[...]
    w2o = w2o_ref[...]

    # ---- hoisted, one-shot input projections (off the serial recurrence) ----
    x = xs_ref[...].astype(w1h.dtype)                      # explicit MXU operand dtype
    pre_h = jnp.dot(x, w1h, preferred_element_type=jnp.float32) + bh_ref[...]  # (T*B, H)
    pre_o = jnp.dot(x, w1o, preferred_element_type=jnp.float32) + bo_ref[...]  # (T*B, Opad)

    # ---- serial recurrence, statically unrolled ----
    h = h0_ref[...].astype(jnp.float32)                    # carry stays f32
    for t in range(T):
        lo = t * B
        hd = h.astype(w2h.dtype)                           # explicit MXU operand dtype
        # output_t uses h_t (pre-update); not on the h -> h_{t+1} critical path
        out_ref[t] = (pre_o[lo:lo + B, :]
                      + jnp.dot(hd, w2o, preferred_element_type=jnp.float32)
                      ).astype(out_ref.dtype)
        z = pre_h[lo:lo + B, :] + jnp.dot(hd, w2h, preferred_element_type=jnp.float32)
        h = 0.5 * jnp.tanh(0.5 * z) + 0.5                  # sigmoid, one transcendental

    hfin_ref[...] = h.astype(hfin_ref.dtype)


def prepare_classification_rnn_params(W_h, b_h, W_o, b_o, *, input_size,
                                       dtype=None):
    """One-time weight prep (transposes / splits / lane-padding hoisted here).

    cat(x, h) @ W.T == x @ W[:, :I].T + h @ W[:, I:].T.  The output-feature
    axis is zero-padded to a multiple of 128 lanes so the kernel's per-step
    output stores are unmasked; pad columns produce exact zeros.
    """
    H = W_h.shape[0]
    O = W_o.shape[0]
    I = input_size
    Opad = ((O + 127) // 128) * 128

    W1h = W_h[:, :I].T                                            # (I, H)
    W2h = W_h[:, I:].T                                            # (H, H)
    W1o = jnp.zeros((I, Opad), W_o.dtype).at[:, :O].set(W_o[:, :I].T)
    W2o = jnp.zeros((H, Opad), W_o.dtype).at[:, :O].set(W_o[:, I:].T)
    b_h2 = b_h.reshape(1, H).astype(jnp.float32)
    b_o2 = jnp.zeros((1, Opad), jnp.float32).at[:, :O].set(b_o.astype(jnp.float32))

    if dtype is not None:   # e.g. jnp.bfloat16 on v6e/v7x; accumulation stays f32
        W1h = W1h.astype(dtype)
        W1o = W1o.astype(dtype)
        W2h = W2h.astype(dtype)
        W2o = W2o.astype(dtype)

    return dict(W1h=W1h, W1o=W1o, W2h=W2h, W2o=W2o, b_h=b_h2, b_o=b_o2,
                hidden_size=H, output_size=O)


def classification_rnn_sequence(xs, h0, params):
    """Runs T RNN steps in ONE pallas_call (single grid step, in-kernel loop).

    xs: (T, B, I), h0: (B, H) -> (outputs (T, B, O), final hidden (B, H))
    """
    W1h, W1o = params["W1h"], params["W1o"]
    W2h, W2o = params["W2h"], params["W2o"]
    b_h, b_o = params["b_h"], params["b_o"]
    H = params["hidden_size"]
    O = params["output_size"]

    T, B, I = xs.shape
    Opad = W1o.shape[1]
    xs_flat = xs.reshape(T * B, I)

    kernel = functools.partial(_rnn_seq_kernel, T=T, B=B)

    out_pad, h_final = pl.pallas_call(
        kernel,
        out_shape=(jax.ShapeDtypeStruct((T, B, Opad), xs.dtype),
                   jax.ShapeDtypeStruct((B, H), xs.dtype)),
        grid=(1,),
        in_specs=[
            pl.BlockSpec((T * B, I), lambda i: (0, 0)),   # all timesteps, once
            pl.BlockSpec((B, H), lambda i: (0, 0)),       # h0
            pl.BlockSpec((I, H), lambda i: (0, 0)),       # W1h
            pl.BlockSpec((I, Opad), lambda i: (0, 0)),    # W1o (padded)
            pl.BlockSpec((H, H), lambda i: (0, 0)),       # W2h
            pl.BlockSpec((H, Opad), lambda i: (0, 0)),    # W2o (padded)
            pl.BlockSpec((1, H), lambda i: (0, 0)),       # b_h
            pl.BlockSpec((1, Opad), lambda i: (0, 0)),    # b_o (padded)
        ],
        out_specs=(
            pl.BlockSpec((T, B, Opad), lambda i: (0, 0, 0)),
            pl.BlockSpec((B, H), lambda i: (0, 0)),
        ),
        compiler_params=pltpu.CompilerParams(
            dimension_semantics=("arbitrary",)),
    )(xs_flat, h0, W1h, W1o, W2h, W2o, b_h, b_o)

    return out_pad[:, :, :O], h_final


def classification_rnn_forward(x, hidden, W_h, b_h, W_o, b_o):
    """Single-step forward matching the PyTorch module's forward() signature.

    (For sequences, call prepare_classification_rnn_params once and use
    classification_rnn_sequence directly — that is the fast path.)
    """
    params = prepare_classification_rnn_params(W_h, b_h, W_o, b_o,
                                               input_size=x.shape[1])
    outs, h_new = classification_rnn_sequence(x[None], hidden, params)
    return outs[0], h_new


def _reference_step(x, h, W_h, b_h, W_o, b_o):
    combined = jnp.concatenate([x, h], axis=1)
    h_new = jax.nn.sigmoid(combined @ W_h.T + b_h)
    out = combined @ W_o.T + b_o
    return out, h_new


if __name__ == "__main__":
    # Small, module-consistent shapes
    B = 2             # batch
    input_size = 16   # "vocab" size
    hidden_size = 32
    output_size = 18  # number of classes (languages)
    T = 8             # sequence length for the fused kernel

    key = jax.random.PRNGKey(0)
    k1, k2, k3, k4, k5, k6 = jax.random.split(key, 6)

    fan_in = input_size + hidden_size
    bound = (1.0 / fan_in) ** 0.5
    W_h = jax.random.uniform(k1, (hidden_size, fan_in), jnp.float32, -bound, bound)
    b_h = jax.random.uniform(k2, (hidden_size,), jnp.float32, -bound, bound)
    W_o = jax.random.uniform(k3, (output_size, fan_in), jnp.float32, -bound, bound)
    b_o = jax.random.uniform(k4, (output_size,), jnp.float32, -bound, bound)

    xs = jax.random.normal(k5, (T, B, input_size), jnp.float32)
    h0 = jax.random.normal(k6, (B, hidden_size), jnp.float32)

    # ---- fused sequence: one pallas_call, in-kernel time loop ----
    params = prepare_classification_rnn_params(W_h, b_h, W_o, b_o,
                                               input_size=input_size)
    outs, h_final = classification_rnn_sequence(xs, h0, params)
    outs = jax.block_until_ready(outs)
    h_final = jax.block_until_ready(h_final)

    # ---- pure-JAX reference (unrolled loop of the module's forward) ----
    h_ref = h0
    ref_outs = []
    for t in range(T):
        o_t, h_ref = _reference_step(xs[t], h_ref, W_h, b_h, W_o, b_o)
        ref_outs.append(o_t)
    ref_outs = jnp.stack(ref_outs)

    assert outs.shape == (T, B, output_size)
    assert h_final.shape == (B, hidden_size)
    assert jnp.allclose(outs, ref_outs, atol=1e-4, rtol=1e-5)
    assert jnp.allclose(h_final, h_ref, atol=1e-4, rtol=1e-5)

    # ---- single-step forward (matches PyTorch module signature) ----
    out1, h1 = classification_rnn_forward(xs[0], h0, W_h, b_h, W_o, b_o)
    out1 = jax.block_until_ready(out1)
    h1 = jax.block_until_ready(h1)
    ref_o1, ref_h1 = _reference_step(xs[0], h0, W_h, b_h, W_o, b_o)
    assert jnp.allclose(out1, ref_o1, atol=1e-4, rtol=1e-5)
    assert jnp.allclose(h1, ref_h1, atol=1e-4, rtol=1e-5)

    print("KERNEL_OK")
</pallas_src>

<mosaic_0001>
module attributes {stable_mosaic.version = 11 : i64} {
  func.func @_rnn_seq_kernel(%arg0: i32, %arg1: memref<16x16xf32, #tpu.memory_space<vmem>>, %arg2: memref<2x32xf32, #tpu.memory_space<vmem>>, %arg3: memref<16x32xf32, #tpu.memory_space<vmem>>, %arg4: memref<16x128xf32, #tpu.memory_space<vmem>>, %arg5: memref<32x32xf32, #tpu.memory_space<vmem>>, %arg6: memref<32x128xf32, #tpu.memory_space<vmem>>, %arg7: memref<1x32xf32, #tpu.memory_space<vmem>>, %arg8: memref<1x128xf32, #tpu.memory_space<vmem>>, %arg9: memref<8x2x128xf32, #tpu.memory_space<vmem>>, %arg10: memref<2x32xf32, #tpu.memory_space<vmem>>) attributes {dimension_semantics = [#tpu.dimension_semantics<arbitrary>], iteration_bounds = array<i64: 1>, scalar_prefetch = 0 : i64, scratch_operands = 0 : i64, tpu.core_type = #tpu.core_type<tc>, window_params = [{pipeline_mode = #tpu.pipeline_mode<synchronous>, transform_indices = @transform_0, window_bounds = array<i64: 16, 16>}, {pipeline_mode = #tpu.pipeline_mode<synchronous>, transform_indices = @transform_1, window_bounds = array<i64: 2, 32>}, {pipeline_mode = #tpu.pipeline_mode<synchronous>, transform_indices = @transform_2, window_bounds = array<i64: 16, 32>}, {pipeline_mode = #tpu.pipeline_mode<synchronous>, transform_indices = @transform_3, window_bounds = array<i64: 16, 128>}, {pipeline_mode = #tpu.pipeline_mode<synchronous>, transform_indices = @transform_4, window_bounds = array<i64: 32, 32>}, {pipeline_mode = #tpu.pipeline_mode<synchronous>, transform_indices = @transform_5, window_bounds = array<i64: 32, 128>}, {pipeline_mode = #tpu.pipeline_mode<synchronous>, transform_indices = @transform_6, window_bounds = array<i64: 1, 32>}, {pipeline_mode = #tpu.pipeline_mode<synchronous>, transform_indices = @transform_7, window_bounds = array<i64: 1, 128>}, {pipeline_mode = #tpu.pipeline_mode<synchronous>, transform_indices = @transform_8, window_bounds = array<i64: 8, 2, 128>}, {pipeline_mode = #tpu.pipeline_mode<synchronous>, transform_indices = @transform_9, window_bounds = array<i64: 2, 32>}]} {
    %c0 = arith.constant 0 : index
    %c0_0 = arith.constant 0 : index
    %0 = vector.load %arg3[%c0, %c0_0] : memref<16x32xf32, #tpu.memory_space<vmem>>, vector<16x32xf32>
    %c0_1 = arith.constant 0 : index
    %c0_2 = arith.constant 0 : index
    %1 = vector.load %arg4[%c0_1, %c0_2] : memref<16x128xf32, #tpu.memory_space<vmem>>, vector<16x128xf32>
    %c0_3 = arith.constant 0 : index
    %c0_4 = arith.constant 0 : index
    %2 = vector.load %arg5[%c0_3, %c0_4] : memref<32x32xf32, #tpu.memory_space<vmem>>, vector<32x32xf32>
    %c0_5 = arith.constant 0 : index
    %c0_6 = arith.constant 0 : index
    %3 = vector.load %arg6[%c0_5, %c0_6] : memref<32x128xf32, #tpu.memory_space<vmem>>, vector<32x128xf32>
    %c0_7 = arith.constant 0 : index
    %c0_8 = arith.constant 0 : index
    %4 = vector.load %arg1[%c0_7, %c0_8] : memref<16x16xf32, #tpu.memory_space<vmem>>, vector<16x16xf32>
    %cst = arith.constant dense<0.000000e+00> : vector<16x32xf32>
    %5 = tpu.matmul %4, %0, %cst {dimension_numbers = #tpu.dot_dimension_numbers<[1], [0], [0], [1], [0, 0, 1, 1], [], []>} : vector<16x16xf32>, vector<16x32xf32>, vector<16x32xf32> -> vector<16x32xf32>
    %c0_9 = arith.constant 0 : index
    %c0_10 = arith.constant 0 : index
    %6 = vector.load %arg7[%c0_9, %c0_10] : memref<1x32xf32, #tpu.memory_space<vmem>>, vector<1x32xf32>
    %7 = vector.broadcast %6 : vector<1x32xf32> to vector<16x32xf32>
    %8 = arith.addf %5, %7 : vector<16x32xf32>
    %cst_11 = arith.constant dense<0.000000e+00> : vector<16x128xf32>
    %9 = tpu.matmul %4, %1, %cst_11 {dimension_numbers = #tpu.dot_dimension_numbers<[1], [0], [0], [1], [0, 0, 1, 1], [], []>} : vector<16x16xf32>, vector<16x128xf32>, vector<16x128xf32> -> vector<16x128xf32>
    %c0_12 = arith.constant 0 : index
    %c0_13 = arith.constant 0 : index
    %10 = vector.load %arg8[%c0_12, %c0_13] : memref<1x128xf32, #tpu.memory_space<vmem>>, vector<1x128xf32>
    %11 = vector.broadcast %10 : vector<1x128xf32> to vector<16x128xf32>
    %12 = arith.addf %9, %11 : vector<16x128xf32>
    %c0_14 = arith.constant 0 : index
    %c0_15 = arith.constant 0 : index
    %13 = vector.load %arg2[%c0_14, %c0_15] : memref<2x32xf32, #tpu.memory_space<vmem>>, vector<2x32xf32>
    %14 = vector.extract_strided_slice %12 {offsets = [0, 0], sizes = [2, 128], strides = [1, 1]} : vector<16x128xf32> to vector<2x128xf32>
    %cst_16 = arith.constant dense<0.000000e+00> : vector<2x128xf32>
    %15 = tpu.matmul %13, %3, %cst_16 {dimension_numbers = #tpu.dot_dimension_numbers<[1], [0], [0], [1], [0, 0, 1, 1], [], []>} : vector<2x32xf32>, vector<32x128xf32>, vector<2x128xf32> -> vector<2x128xf32>
    %16 = arith.addf %14, %15 : vector<2x128xf32>
    %c0_17 = arith.constant 0 : index
    %c0_18 = arith.constant 0 : index
    %c0_19 = arith.constant 0 : index
    %17 = vector.load %arg9[%c0_17, %c0_18, %c0_19] : memref<8x2x128xf32, #tpu.memory_space<vmem>>, vector<1x2x128xf32>
    %18 = vector.shape_cast %17 : vector<1x2x128xf32> to vector<2x128xf32>
    %19 = vector.shape_cast %16 : vector<2x128xf32> to vector<1x2x128xf32>
    tpu.vector_store %arg9[%c0_17, %c0_18, %c0_19], %19 {strides = array<i32>} : memref<8x2x128xf32, #tpu.memory_space<vmem>>, vector<1x2x128xf32>,
    %20 = vector.extract_strided_slice %8 {offsets = [0, 0], sizes = [2, 32], strides = [1, 1]} : vector<16x32xf32> to vector<2x32xf32>
    %cst_20 = arith.constant dense<0.000000e+00> : vector<2x32xf32>
    %21 = tpu.matmul %13, %2, %cst_20 {dimension_numbers = #tpu.dot_dimension_numbers<[1], [0], [0], [1], [0, 0, 1, 1], [], []>} : vector<2x32xf32>, vector<32x32xf32>, vector<2x32xf32> -> vector<2x32xf32>
    %22 = arith.addf %20, %21 : vector<2x32xf32>
    %cst_21 = arith.constant 5.000000e-01 : f32
    %23 = vector.broadcast %cst_21 : f32 to vector<2x32xf32>
    %24 = arith.mulf %23, %22 : vector<2x32xf32>
    %25 = math.tanh %24 : vector<2x32xf32>
    %cst_22 = arith.constant 5.000000e-01 : f32
    %26 = vector.broadcast %cst_22 : f32 to vector<2x32xf32>
    %27 = arith.mulf %26, %25 : vector<2x32xf32>
    %cst_23 = arith.constant 5.000000e-01 : f32
    %28 = vector.broadcast %cst_23 : f32 to vector<2x32xf32>
    %29 = arith.addf %27, %28 : vector<2x32xf32>
    %30 = vector.extract_strided_slice %12 {offsets = [2, 0], sizes = [2, 128], strides = [1, 1]} : vector<16x128xf32> to vector<2x128xf32>
    %cst_24 = arith.constant dense<0.000000e+00> : vector<2x128xf32>
    %31 = tpu.matmul %29, %3, %cst_24 {dimension_numbers = #tpu.dot_dimension_numbers<[1], [0], [0], [1], [0, 0, 1, 1], [], []>} : vector<2x32xf32>, vector<32x128xf32>, vector<2x128xf32> -> vector<2x128xf32>
    %32 = arith.addf %30, %31 : vector<2x128xf32>
    %c1 = arith.constant 1 : index
    %c0_25 = arith.constant 0 : index
    %c0_26 = arith.constant 0 : index
    %33 = vector.load %arg9[%c1, %c0_25, %c0_26] : memref<8x2x128xf32, #tpu.memory_space<vmem>>, vector<1x2x128xf32>
    %34 = vector.shape_cast %33 : vector<1x2x128xf32> to vector<2x128xf32>
    %35 = vector.shape_cast %32 : vector<2x128xf32> to vector<1x2x128xf32>
    tpu.vector_store %arg9[%c1, %c0_25, %c0_26], %35 {strides = array<i32>} : memref<8x2x128xf32, #tpu.memory_space<vmem>>, vector<1x2x128xf32>,
    %36 = vector.extract_strided_slice %8 {offsets = [2, 0], sizes = [2, 32], strides = [1, 1]} : vector<16x32xf32> to vector<2x32xf32>
    %cst_27 = arith.constant dense<0.000000e+00> : vector<2x32xf32>
    %37 = tpu.matmul %29, %2, %cst_27 {dimension_numbers = #tpu.dot_dimension_numbers<[1], [0], [0], [1], [0, 0, 1, 1], [], []>} : vector<2x32xf32>, vector<32x32xf32>, vector<2x32xf32> -> vector<2x32xf32>
    %38 = arith.addf %36, %37 : vector<2x32xf32>
    %cst_28 = arith.constant 5.000000e-01 : f32
    %39 = vector.broadcast %cst_28 : f32 to vector<2x32xf32>
    %40 = arith.mulf %39, %38 : vector<2x32xf32>
    %41 = math.tanh %40 : vector<2x32xf32>
    %cst_29 = arith.constant 5.000000e-01 : f32
    %42 = vector.broadcast %cst_29 : f32 to vector<2x32xf32>
    %43 = arith.mulf %42, %41 : vector<2x32xf32>
    %cst_30 = arith.constant 5.000000e-01 : f32
    %44 = vector.broadcast %cst_30 : f32 to vector<2x32xf32>
    %45 = arith.addf %43, %44 : vector<2x32xf32>
    %46 = vector.extract_strided_slice %12 {offsets = [4, 0], sizes = [2, 128], strides = [1, 1]} : vector<16x128xf32> to vector<2x128xf32>
    %cst_31 = arith.constant dense<0.000000e+00> : vector<2x128xf32>
    %47 = tpu.matmul %45, %3, %cst_31 {dimension_numbers = #tpu.dot_dimension_numbers<[1], [0], [0], [1], [0, 0, 1, 1], [], []>} : vector<2x32xf32>, vector<32x128xf32>, vector<2x128xf32> -> vector<2x128xf32>
    %48 = arith.addf %46, %47 : vector<2x128xf32>
    %c2 = arith.constant 2 : index
    %c0_32 = arith.constant 0 : index
    %c0_33 = arith.constant 0 : index
    %49 = vector.load %arg9[%c2, %c0_32, %c0_33] : memref<8x2x128xf32, #tpu.memory_space<vmem>>, vector<1x2x128xf32>
    %50 = vector.shape_cast %49 : vector<1x2x128xf32> to vector<2x128xf32>
    %51 = vector.shape_cast %48 : vector<2x128xf32> to vector<1x2x128xf32>
    tpu.vector_store %arg9[%c2, %c0_32, %c0_33], %51 {strides = array<i32>} : memref<8x2x128xf32, #tpu.memory_space<vmem>>, vector<1x2x128xf32>,
    %52 = vector.extract_strided_slice %8 {offsets = [4, 0], sizes = [2, 32], strides = [1, 1]} : vector<16x32xf32> to vector<2x32xf32>
    %cst_34 = arith.constant dense<0.000000e+00> : vector<2x32xf32>
    %53 = tpu.matmul %45, %2, %cst_34 {dimension_numbers = #tpu.dot_dimension_numbers<[1], [0], [0], [1], [0, 0, 1, 1], [], []>} : vector<2x32xf32>, vector<32x32xf32>, vector<2x32xf32> -> vector<2x32xf32>
    %54 = arith.addf %52, %53 : vector<2x32xf32>
    %cst_35 = arith.constant 5.000000e-01 : f32
    %55 = vector.broadcast %cst_35 : f32 to vector<2x32xf32>
    %56 = arith.mulf %55, %54 : vector<2x32xf32>
    %57 = math.tanh %56 : vector<2x32xf32>
    %cst_36 = arith.constant 5.000000e-01 : f32
    %58 = vector.broadcast %cst_36 : f32 to vector<2x32xf32>
    %59 = arith.mulf %58, %57 : vector<2x32xf32>
    %cst_37 = arith.constant 5.000000e-01 : f32
    %60 = vector.broadcast %cst_37 : f32 to vector<2x32xf32>
    %61 = arith.addf %59, %60 : vector<2x32xf32>
    %62 = vector.extract_strided_slice %12 {offsets = [6, 0], sizes = [2, 128], strides = [1, 1]} : vector<16x128xf32> to vector<2x128xf32>
    %cst_38 = arith.constant dense<0.000000e+00> : vector<2x128xf32>
    %63 = tpu.matmul %61, %3, %cst_38 {dimension_numbers = #tpu.dot_dimension_numbers<[1], [0], [0], [1], [0, 0, 1, 1], [], []>} : vector<2x32xf32>, vector<32x128xf32>, vector<2x128xf32> -> vector<2x128xf32>
    %64 = arith.addf %62, %63 : vector<2x128xf32>
    %c3 = arith.constant 3 : index
    %c0_39 = arith.constant 0 : index
    %c0_40 = arith.constant 0 : index
    %65 = vector.load %arg9[%c3, %c0_39, %c0_40] : memref<8x2x128xf32, #tpu.memory_space<vmem>>, vector<1x2x128xf32>
    %66 = vector.shape_cast %65 : vector<1x2x128xf32> to vector<2x128xf32>
    %67 = vector.shape_cast %64 : vector<2x128xf32> to vector<1x2x128xf32>
    tpu.vector_store %arg9[%c3, %c0_39, %c0_40], %67 {strides = array<i32>} : memref<8x2x128xf32, #tpu.memory_space<vmem>>, vector<1x2x128xf32>,
    %68 = vector.extract_strided_slice %8 {offsets = [6, 0], sizes = [2, 32], strides = [1, 1]} : vector<16x32xf32> to vector<2x32xf32>
    %cst_41 = arith.constant dense<0.000000e+00> : vector<2x32xf32>
    %69 = tpu.matmul %61, %2, %cst_41 {dimension_numbers = #tpu.dot_dimension_numbers<[1], [0], [0], [1], [0, 0, 1, 1], [], []>} : vector<2x32xf32>, vector<32x32xf32>, vector<2x32xf32> -> vector<2x32xf32>
    %70 = arith.addf %68, %69 : vector<2x32xf32>
    %cst_42 = arith.constant 5.000000e-01 : f32
    %71 = vector.broadcast %cst_42 : f32 to vector<2x32xf32>
    %72 = arith.mulf %71, %70 : vector<2x32xf32>
    %73 = math.tanh %72 : vector<2x32xf32>
    %cst_43 = arith.constant 5.000000e-01 : f32
    %74 = vector.broadcast %cst_43 : f32 to vector<2x32xf32>
    %75 = arith.mulf %74, %73 : vector<2x32xf32>
    %cst_44 = arith.constant 5.000000e-01 : f32
    %76 = vector.broadcast %cst_44 : f32 to vector<2x32xf32>
    %77 = arith.addf %75, %76 : vector<2x32xf32>
    %78 = vector.extract_strided_slice %12 {offsets = [8, 0], sizes = [2, 128], strides = [1, 1]} : vector<16x128xf32> to vector<2x128xf32>
    %cst_45 = arith.constant dense<0.000000e+00> : vector<2x128xf32>
    %79 = tpu.matmul %77, %3, %cst_45 {dimension_numbers = #tpu.dot_dimension_numbers<[1], [0], [0], [1], [0, 0, 1, 1], [], []>} : vector<2x32xf32>, vector<32x128xf32>, vector<2x128xf32> -> vector<2x128xf32>
    %80 = arith.addf %78, %79 : vector<2x128xf32>
    %c4 = arith.constant 4 : index
    %c0_46 = arith.constant 0 : index
    %c0_47 = arith.constant 0 : index
    %81 = vector.load %arg9[%c4, %c0_46, %c0_47] : memref<8x2x128xf32, #tpu.memory_space<vmem>>, vector<1x2x128xf32>
    %82 = vector.shape_cast %81 : vector<1x2x128xf32> to vector<2x128xf32>
    %83 = vector.shape_cast %80 : vector<2x128xf32> to vector<1x2x128xf32>
    tpu.vector_store %arg9[%c4, %c0_46, %c0_47], %83 {strides = array<i32>} : memref<8x2x128xf32, #tpu.memory_space<vmem>>, vector<1x2x128xf32>,
    %84 = vector.extract_strided_slice %8 {offsets = [8, 0], sizes = [2, 32], strides = [1, 1]} : vector<16x32xf32> to vector<2x32xf32>
    %cst_48 = arith.constant dense<0.000000e+00> : vector<2x32xf32>
    %85 = tpu.matmul %77, %2, %cst_48 {dimension_numbers = #tpu.dot_dimension_numbers<[1], [0], [0], [1], [0, 0, 1, 1], [], []>} : vector<2x32xf32>, vector<32x32xf32>, vector<2x32xf32> -> vector<2x32xf32>
    %86 = arith.addf %84, %85 : vector<2x32xf32>
    %cst_49 = arith.constant 5.000000e-01 : f32
    %87 = vector.broadcast %cst_49 : f32 to vector<2x32xf32>
    %88 = arith.mulf %87, %86 : vector<2x32xf32>
    %89 = math.tanh %88 : vector<2x32xf32>
    %cst_50 = arith.constant 5.000000e-01 : f32
    %90 = vector.broadcast %cst_50 : f32 to vector<2x32xf32>
    %91 = arith.mulf %90, %89 : vector<2x32xf32>
    %cst_51 = arith.constant 5.000000e-01 : f32
    %92 = vector.broadcast %cst_51 : f32 to vector<2x32xf32>
    %93 = arith.addf %91, %92 : vector<2x32xf32>
    %94 = vector.extract_strided_slice %12 {offsets = [10, 0], sizes = [2, 128], strides = [1, 1]} : vector<16x128xf32> to vector<2x128xf32>
    %cst_52 = arith.constant dense<0.000000e+00> : vector<2x128xf32>
    %95 = tpu.matmul %93, %3, %cst_52 {dimension_numbers = #tpu.dot_dimension_numbers<[1], [0], [0], [1], [0, 0, 1, 1], [], []>} : vector<2x32xf32>, vector<32x128xf32>, vector<2x128xf32> -> vector<2x128xf32>
    %96 = arith.addf %94, %95 : vector<2x128xf32>
    %c5 = arith.constant 5 : index
    %c0_53 = arith.constant 0 : index
    %c0_54 = arith.constant 0 : index
    %97 = vector.load %arg9[%c5, %c0_53, %c0_54] : memref<8x2x128xf32, #tpu.memory_space<vmem>>, vector<1x2x128xf32>
    %98 = vector.shape_cast %97 : vector<1x2x128xf32> to vector<2x128xf32>
    %99 = vector.shape_cast %96 : vector<2x128xf32> to vector<1x2x128xf32>
    tpu.vector_store %arg9[%c5, %c0_53, %c0_54], %99 {strides = array<i32>} : memref<8x2x128xf32, #tpu.memory_space<vmem>>, vector<1x2x128xf32>,
    %100 = vector.extract_strided_slice %8 {offsets = [10, 0], sizes = [2, 32], strides = [1, 1]} : vector<16x32xf32> to vector<2x32xf32>
    %cst_55 = arith.constant dense<0.000000e+00> : vector<2x32xf32>
    %101 = tpu.matmul %93, %2, %cst_55 {dimension_numbers = #tpu.dot_dimension_numbers<[1], [0], [0], [1], [0, 0, 1, 1], [], []>} : vector<2x32xf32>, vector<32x32xf32>, vector<2x32xf32> -> vector<2x32xf32>
    %102 = arith.addf %100, %101 : vector<2x32xf32>
    %cst_56 = arith.constant 5.000000e-01 : f32
    %103 = vector.broadcast %cst_56 : f32 to vector<2x32xf32>
    %104 = arith.mulf %103, %102 : vector<2x32xf32>
    %105 = math.tanh %104 : vector<2x32xf32>
    %cst_57 = arith.constant 5.000000e-01 : f32
    %106 = vector.broadcast %cst_57 : f32 to vector<2x32xf32>
    %107 = arith.mulf %106, %105 : vector<2x32xf32>
    %cst_58 = arith.constant 5.000000e-01 : f32
    %108 = vector.broadcast %cst_58 : f32 to vector<2x32xf32>
    %109 = arith.addf %107, %108 : vector<2x32xf32>
    %110 = vector.extract_strided_slice %12 {offsets = [12, 0], sizes = [2, 128], strides = [1, 1]} : vector<16x128xf32> to vector<2x128xf32>
    %cst_59 = arith.constant dense<0.000000e+00> : vector<2x128xf32>
    %111 = tpu.matmul %109, %3, %cst_59 {dimension_numbers = #tpu.dot_dimension_numbers<[1], [0], [0], [1], [0, 0, 1, 1], [], []>} : vector<2x32xf32>, vector<32x128xf32>, vector<2x128xf32> -> vector<2x128xf32>
    %112 = arith.addf %110, %111 : vector<2x128xf32>
    %c6 = arith.constant 6 : index
    %c0_60 = arith.constant 0 : index
    %c0_61 = arith.constant 0 : index
    %113 = vector.load %arg9[%c6, %c0_60, %c0_61] : memref<8x2x128xf32, #tpu.memory_space<vmem>>, vector<1x2x128xf32>
    %114 = vector.shape_cast %113 : vector<1x2x128xf32> to vector<2x128xf32>
    %115 = vector.shape_cast %112 : vector<2x128xf32> to vector<1x2x128xf32>
    tpu.vector_store %arg9[%c6, %c0_60, %c0_61], %115 {strides = array<i32>} : memref<8x2x128xf32, #tpu.memory_space<vmem>>, vector<1x2x128xf32>,
    %116 = vector.extract_strided_slice %8 {offsets = [12, 0], sizes = [2, 32], strides = [1, 1]} : vector<16x32xf32> to vector<2x32xf32>
    %cst_62 = arith.constant dense<0.000000e+00> : vector<2x32xf32>
    %117 = tpu.matmul %109, %2, %cst_62 {dimension_numbers = #tpu.dot_dimension_numbers<[1], [0], [0], [1], [0, 0, 1, 1], [], []>} : vector<2x32xf32>, vector<32x32xf32>, vector<2x32xf32> -> vector<2x32xf32>
    %118 = arith.addf %116, %117 : vector<2x32xf32>
    %cst_63 = arith.constant 5.000000e-01 : f32
    %119 = vector.broadcast %cst_63 : f32 to vector<2x32xf32>
    %120 = arith.mulf %119, %118 : vector<2x32xf32>
    %121 = math.tanh %120 : vector<2x32xf32>
    %cst_64 = arith.constant 5.000000e-01 : f32
    %122 = vector.broadcast %cst_64 : f32 to vector<2x32xf32>
    %123 = arith.mulf %122, %121 : vector<2x32xf32>
    %cst_65 = arith.constant 5.000000e-01 : f32
    %124 = vector.broadcast %cst_65 : f32 to vector<2x32xf32>
    %125 = arith.addf %123, %124 : vector<2x32xf32>
    %126 = vector.extract_strided_slice %12 {offsets = [14, 0], sizes = [2, 128], strides = [1, 1]} : vector<16x128xf32> to vector<2x128xf32>
    %cst_66 = arith.constant dense<0.000000e+00> : vector<2x128xf32>
    %127 = tpu.matmul %125, %3, %cst_66 {dimension_numbers = #tpu.dot_dimension_numbers<[1], [0], [0], [1], [0, 0, 1, 1], [], []>} : vector<2x32xf32>, vector<32x128xf32>, vector<2x128xf32> -> vector<2x128xf32>
    %128 = arith.addf %126, %127 : vector<2x128xf32>
    %c7 = arith.constant 7 : index
    %c0_67 = arith.constant 0 : index
    %c0_68 = arith.constant 0 : index
    %129 = vector.load %arg9[%c7, %c0_67, %c0_68] : memref<8x2x128xf32, #tpu.memory_space<vmem>>, vector<1x2x128xf32>
    %130 = vector.shape_cast %129 : vector<1x2x128xf32> to vector<2x128xf32>
    %131 = vector.shape_cast %128 : vector<2x128xf32> to vector<1x2x128xf32>
    tpu.vector_store %arg9[%c7, %c0_67, %c0_68], %131 {strides = array<i32>} : memref<8x2x128xf32, #tpu.memory_space<vmem>>, vector<1x2x128xf32>,
    %132 = vector.extract_strided_slice %8 {offsets = [14, 0], sizes = [2, 32], strides = [1, 1]} : vector<16x32xf32> to vector<2x32xf32>
    %cst_69 = arith.constant dense<0.000000e+00> : vector<2x32xf32>
    %133 = tpu.matmul %125, %2, %cst_69 {dimension_numbers = #tpu.dot_dimension_numbers<[1], [0], [0], [1], [0, 0, 1, 1], [], []>} : vector<2x32xf32>, vector<32x32xf32>, vector<2x32xf32> -> vector<2x32xf32>
    %134 = arith.addf %132, %133 : vector<2x32xf32>
    %cst_70 = arith.constant 5.000000e-01 : f32
    %135 = vector.broadcast %cst_70 : f32 to vector<2x32xf32>
    %136 = arith.mulf %135, %134 : vector<2x32xf32>
    %137 = math.tanh %136 : vector<2x32xf32>
    %cst_71 = arith.constant 5.000000e-01 : f32
    %138 = vector.broadcast %cst_71 : f32 to vector<2x32xf32>
    %139 = arith.mulf %138, %137 : vector<2x32xf32>
    %cst_72 = arith.constant 5.000000e-01 : f32
    %140 = vector.broadcast %cst_72 : f32 to vector<2x32xf32>
    %141 = arith.addf %139, %140 : vector<2x32xf32>
    %c0_73 = arith.constant 0 : index
    %c0_74 = arith.constant 0 : index
    %142 = vector.load %arg10[%c0_73, %c0_74] : memref<2x32xf32, #tpu.memory_space<vmem>>, vector<2x32xf32>
    tpu.vector_store %arg10[%c0_73, %c0_74], %141 {strides = array<i32>} : memref<2x32xf32, #tpu.memory_space<vmem>>, vector<2x32xf32>,
    return
  }
  func.func @transform_0(%arg0: i32) -> (i32, i32) {
    %c0_i32 = arith.constant 0 : i32
    %c0_i32_0 = arith.constant 0 : i32
    %c0_i32_1 = arith.constant 0 : i32
    return %c0_i32, %c0_i32_0 : i32, i32
  }
  func.func @transform_1(%arg0: i32) -> (i32, i32) {
    %c0_i32 = arith.constant 0 : i32
    %c0_i32_0 = arith.constant 0 : i32
    %c0_i32_1 = arith.constant 0 : i32
    return %c0_i32, %c0_i32_0 : i32, i32
  }
  func.func @transform_2(%arg0: i32) -> (i32, i32) {
    %c0_i32 = arith.constant 0 : i32
    %c0_i32_0 = arith.constant 0 : i32
    %c0_i32_1 = arith.constant 0 : i32
    return %c0_i32, %c0_i32_0 : i32, i32
  }
  func.func @transform_3(%arg0: i32) -> (i32, i32) {
    %c0_i32 = arith.constant 0 : i32
    %c0_i32_0 = arith.constant 0 : i32
    %c0_i32_1 = arith.constant 0 : i32
    return %c0_i32, %c0_i32_0 : i32, i32
  }
  func.func @transform_4(%arg0: i32) -> (i32, i32) {
    %c0_i32 = arith.constant 0 : i32
    %c0_i32_0 = arith.constant 0 : i32
    %c0_i32_1 = arith.constant 0 : i32
    return %c0_i32, %c0_i32_0 : i32, i32
  }
  func.func @transform_5(%arg0: i32) -> (i32, i32) {
    %c0_i32 = arith.constant 0 : i32
    %c0_i32_0 = arith.constant 0 : i32
    %c0_i32_1 = arith.constant 0 : i32
    return %c0_i32, %c0_i32_0 : i32, i32
  }
  func.func @transform_6(%arg0: i32) -> (i32, i32) {
    %c0_i32 = arith.constant 0 : i32
    %c0_i32_0 = arith.constant 0 : i32
    %c0_i32_1 = arith.constant 0 : i32
    return %c0_i32, %c0_i32_0 : i32, i32
  }
  func.func @transform_7(%arg0: i32) -> (i32, i32) {
    %c0_i32 = arith.constant 0 : i32
    %c0_i32_0 = arith.constant 0 : i32
    %c0_i32_1 = arith.constant 0 : i32
    return %c0_i32, %c0_i32_0 : i32, i32
  }
  func.func @transform_8(%arg0: i32) -> (i32, i32, i32) {
    %c0_i32 = arith.constant 0 : i32
    %c0_i32_0 = arith.constant 0 : i32
    %c0_i32_1 = arith.constant 0 : i32
    %c0_i32_2 = arith.constant 0 : i32
    return %c0_i32, %c0_i32_0, %c0_i32_1 : i32, i32, i32
  }
  func.func @transform_9(%arg0: i32) -> (i32, i32) {
    %c0_i32 = arith.constant 0 : i32
    %c0_i32_0 = arith.constant 0 : i32
    %c0_i32_1 = arith.constant 0 : i32
    return %c0_i32, %c0_i32_0 : i32, i32
  }
}

</mosaic_0001>

<bundles_post_ra>
// kernel: tpu_custom_call.1
= control target key start
LH: loop header
LB: loop body
LE: loop exit
PB: predicated region body
PF: predicated region fallthrough
CT: control target
= control target key end

     0   :  { %15 = vsyncpa [#allocation3], 0  ;;  %s2503_s0 = inlined_call_operand.hbm [shape: f32[16,16], index: 0, kind: input, shape index: {}]   ;;  %s2504_s1 = inlined_call_operand.vmem [shape: f32[2,32], index: 1, kind: input, shape index: {}]   ;;  %s2505_s2 = inlined_call_operand.hbm [shape: f32[16,32], index: 2, kind: input, shape index: {}]   ;;  %s2506_s3 = inlined_call_operand.hbm [shape: f32[16,128], index: 3, kind: input, shape index: {}]   ;;  %s2507_s4 = inlined_call_operand.hbm [shape: f32[32,32], index: 4, kind: input, shape index: {}]   ;;  %s2508_s5 = inlined_call_operand.hbm [shape: f32[32,128], index: 5, kind: input, shape index: {}]   ;;  %s2509_s6 = inlined_call_operand.vmem [shape: f32[1,32], index: 6, kind: input, shape index: {}]   ;;  %s2510_s7 = inlined_call_operand.vmem [shape: f32[1,128], index: 7, kind: input, shape index: {}]   ;;  %s2511_s8 = inlined_call_operand.hbm [shape: f32[8,2,128], index: 8, kind: output, shape index: {0}]   ;;  %s2512_s9 = inlined_call_operand.hbm [shape: f32[2,32], index: 9, kind: output, shape index: {1}]  }
   0x1   :  { %16 = vsyncpa [#allocation6], 0 }
   0x2   :  { %17 = vsyncpa [#allocation9], 0 }
   0x3   :  { %18 = vsyncpa [#allocation4], 0 }
   0x4   :  { %19 = vsyncpa [#allocation13], 0  ;;  %s2169_s30 = smov [#allocation5]   ;;  %s2170_s11 = smov [#allocation8]  }
   0x5   :  { %s39_s10 = sshll.u32 %s2169_s30, 4  ;;  %s63_s12 = sshll.u32 %s2170_s11, 4  ;;  %s40_s10 = int_to_ptr.vmem [resolvable:$true] %s39_s10  ;;  %s2233_s12 = int_to_ptr.vmem [resolvable:$true] %s63_s12 }
   0x6   :  { %s2005_s15 = scalar_lea.hbm %s2505_s2, 256 }
   0x7   :  { %p2006_p0 = scmp.ne.s32.totalorder %s2505_s2, %s2005_s15  ;;  %p2009_p1 = scmp.lt.u32.totalorder %s2005_s15, %s2505_s2 }
   0x9   :  { %p2011_p2 = pnand %p2009_p1, %p2006_p0 }
   0xb   :  { %2014 = shalt.err (!%p2011_p2)
}
   0xc   :  { %s2015_s20 = scalar_lea.vmem %s40_s10, 256  ;;  %p2020_p4 = scmp.lt.s32.totalorder %s40_s10, %s40_s10 }
   0xd   :  { %p2016_p3 = scmp.ne.s32.totalorder %s40_s10, %s2015_s20  ;;  %p2021_p5 = scmp.lt.s32.totalorder %s2015_s20, %s2015_s20 }
   0xf   :  { %p2022_p6 = por %p2021_p5, %p2020_p4 }
  0x11   :  { %p2023_p7 = pnand %p2022_p6, %p2016_p3 }
  0x13   :  { %2026 = shalt.err (!%p2023_p7)
}
  0x14   :  { %s2171_s21 = smov 128   ;;  %s2172_s22 = smov 8  }
  0x15   :  { %45 = dma.hbm_to_vmem [thread:$0]  %s2505_s2, 256, %s40_s10, [#allocation6], %s2171_s21, %s2171_s21, %s2172_s22  }
  0x16   :  { %s2027_s27 = scalar_lea.hbm %s2507_s4, 512 }
  0x17   :  { %p2028_p8 = scmp.ne.s32.totalorder %s2507_s4, %s2027_s27  ;;  %p2031_p9 = scmp.lt.u32.totalorder %s2027_s27, %s2507_s4 }
  0x19   :  { %p2033_p10 = pnand %p2031_p9, %p2028_p8 }
  0x1b   :  { %2036 = shalt.err (!%p2033_p10)
}
  0x1c   :  { %s2037_s13 = scalar_lea.vmem %s2233_s12, 512  ;;  %p2042_p12 = scmp.lt.s32.totalorder %s2233_s12, %s2233_s12 }
  0x1d   :  { %p2038_p11 = scmp.ne.s32.totalorder %s2233_s12, %s2037_s13  ;;  %p2043_p13 = scmp.lt.s32.totalorder %s2037_s13, %s2037_s13 }
  0x1f   :  { %p2044_p0 = por %p2043_p13, %p2042_p12 }
  0x21   :  { %p2045_p1 = pnand %p2044_p0, %p2038_p11 }
  0x23   :  { %2048 = shalt.err (!%p2045_p1)
}
  0x24   :  { %69 = dma.hbm_to_vmem [thread:$0]  %s2507_s4, 512, %s2233_s12, [#allocation9], %s2171_s21, %s2171_s21, %s2172_s22  }
  0x25   :  { %s2173_s14 = smov [#allocation2]   ;;  %s2174_s16 = smov [#allocation7]  }
  0x26   :  { %s25_s15 = sshll.u32 %s2173_s14, 4  ;;  %s51_s17 = sshll.u32 %s2174_s16, 4  ;;  %s26_s15 = int_to_ptr.vmem [resolvable:$true] %s25_s15  ;;  %s2270_s17 = int_to_ptr.vmem [resolvable:$true] %s51_s17 }
  0x27   :  { %s2049_s20 = scalar_lea.hbm %s2503_s0, 256 }
  0x28   :  { %p2050_p2 = scmp.ne.s32.totalorder %s2503_s0, %s2049_s20  ;;  %p2053_p3 = scmp.lt.u32.totalorder %s2049_s20, %s2503_s0 }
  0x2a   :  { %p2055_p4 = pnand %p2053_p3, %p2050_p2 }
  0x2c   :  { %2058 = shalt.err (!%p2055_p4)
}
  0x2d   :  { %s2059_s4 = scalar_lea.vmem %s26_s15, 256  ;;  %p2064_p6 = scmp.lt.s32.totalorder %s26_s15, %s26_s15 }
  0x2e   :  { %p2060_p5 = scmp.ne.s32.totalorder %s26_s15, %s2059_s4  ;;  %p2065_p7 = scmp.lt.s32.totalorder %s2059_s4, %s2059_s4 }
  0x30   :  { %p2066_p8 = por %p2065_p7, %p2064_p6 }
  0x32   :  { %p2067_p9 = pnand %p2066_p8, %p2060_p5 }
  0x34   :  { %2070 = shalt.err (!%p2067_p9)
}
  0x35   :  { %31 = dma.hbm_to_vmem [thread:$0]  %s2503_s0, 256, %s26_s15, [#allocation3], %s2171_s21, %s2171_s21, %s2172_s22  }
  0x36   :  { %s2071_s30 = scalar_lea.hbm %s2506_s3, 256 }
  0x37   :  { %p2072_p10 = scmp.ne.s32.totalorder %s2506_s3, %s2071_s30  ;;  %p2075_p11 = scmp.lt.u32.totalorder %s2071_s30, %s2506_s3 }
  0x39   :  { %p2077_p12 = pnand %p2075_p11, %p2072_p10 }
  0x3b   :  { %2080 = shalt.err (!%p2077_p12)
}
  0x3c   :  { %s2081_s14 = scalar_lea.vmem %s2270_s17, 256  ;;  %p2086_p0 = scmp.lt.s32.totalorder %s2270_s17, %s2270_s17 }
  0x3d   :  { %p2082_p13 = scmp.ne.s32.totalorder %s2270_s17, %s2081_s14  ;;  %p2087_p1 = scmp.lt.s32.totalorder %s2081_s14, %s2081_s14 }
  0x3f   :  { %p2088_p2 = por %p2087_p1, %p2086_p0 }
  0x41   :  { %p2089_p3 = pnand %p2088_p2, %p2082_p13 }
  0x43   :  { %2092 = shalt.err (!%p2089_p3)
}
  0x44   :  { %57 = dma.hbm_to_vmem [thread:$0]  %s2506_s3, 256, %s2270_s17, [#allocation6], %s2171_s21, %s2171_s21, %s2172_s22  }
  0x45   :  { %s2175_s16 = smov [#allocation10]   ;;  %s2093_s23 = scalar_lea.hbm %s2508_s5, 512 }
  0x46   :  { %s75_s18 = sshll.u32 %s2175_s16, 4  ;;  %p2094_p4 = scmp.ne.s32.totalorder %s2508_s5, %s2093_s23  ;;  %s76_s18 = int_to_ptr.vmem [resolvable:$true] %s75_s18 }
  0x47   :  { %p2097_p5 = scmp.lt.u32.totalorder %s2093_s23, %s2508_s5 }
  0x49   :  { %p2099_p6 = pnand %p2097_p5, %p2094_p4 }
  0x4b   :  { %2102 = shalt.err (!%p2099_p6)
}
  0x4c   :  { %s2103_s12 = scalar_lea.vmem %s76_s18, 512  ;;  %p2108_p8 = scmp.lt.s32.totalorder %s76_s18, %s76_s18 }
  0x4d   :  { %p2104_p7 = scmp.ne.s32.totalorder %s76_s18, %s2103_s12  ;;  %p2109_p9 = scmp.lt.s32.totalorder %s2103_s12, %s2103_s12 }
  0x4f   :  { %p2110_p10 = por %p2109_p9, %p2108_p8 }
  0x51   :  { %p2111_p11 = pnand %p2110_p10, %p2104_p7 }
  0x53   :  { %2114 = shalt.err (!%p2111_p11)
}
  0x54   :  { %81 = dma.hbm_to_vmem [thread:$0]  %s2508_s5, 512, %s76_s18, [#allocation9], %s2171_s21, %s2171_s21, %s2172_s22  }
  0x55   :  { %2159 = dma.done.wait [#allocation3], 256  }
  0x56   :  { %2160 = vsyncadd [#allocation3], 4294967040 }
  0x57   :  { %2161 = dma.done.wait [#allocation6], 512  }
  0x58   :  { %2162 = vsyncadd [#allocation6], 4294966784 }
  0x59   :  { %2163 = dma.done.wait [#allocation9], 1024  }
  0x5a   :  { %2164 = vsyncadd [#allocation9], 4294966272  ;;  %vm122_vm0 = vcmask 130048   ;;  %v101_v0 = vld [vmem:[#allocation5] sm:$0xff]  ;;  %v102_v1 = vld [vmem:[#allocation5 + $0x8] sm:$0xff]  ;;  %v2176_v13 = vmov 0.0|0.0  }
  0x5b   :  { %v103_v2 = vld [vmem:[#allocation7] sm:$0xff]  ;;  %v1871_v3 = vpack.c.bf16 %v102_v1, %v101_v0  ;;  %v104_v4 = vld [vmem:[#allocation7 + $0x8] sm:$0xff]  ;;  %v109_v7 = vld [vmem:[#allocation10] sm:$0xff]  ;;  %vm2177_vm1 = vmmov 0   ;;  %v2178_v21 = vmov 0.0   ;;  %vm287_vm2 = vcmask 261120  }
  0x5c   :  { %v113_v5 = vld [vmem:[#allocation2] sm:$0xff]  ;;  %v1875_v6 = vpack.c.bf16 %v104_v4, %v103_v2  ;;  %v110_v8 = vld [vmem:[#allocation10 + $0x8] sm:$0xff]  ;;  %v105_v9 = vld [vmem:[#allocation8] sm:$0xff] }
  0x5d   :  { %1692 = vmatprep.mubr.msk.f32.mxu1 %vm122_vm0, %v113_v5  ;;  %1685 = vmatprep.mubr.msk.f32.mxu0 %vm122_vm0, %v113_v5  ;;  %v106_v10 = vld [vmem:[#allocation8 + $0x8] sm:$0xff]  ;;  %v114_v11 = vld [vmem:[#allocation2 + $0x8] sm:$0xff]  ;;  %v2324_v12 = vpack.c.bf16 %v110_v8, %v109_v7  ;;  %v111_v15 = vld [vmem:[#allocation10 + $0x10] sm:$0xff] }
  0x5e   :  { %1872 = vmatprep.subr.bf16.mxu0 %v1871_v3  ;;  %1876 = vmatprep.subr.bf16.mxu1 %v1875_v6  ;;  %v2327_v14 = vpack.c.bf16 %v106_v10, %v105_v9  ;;  %v112_v16 = vld [vmem:[#allocation10 + $0x18] sm:$0xff]  ;;  %v107_v17 = vld [vmem:[#allocation8 + $0x10] sm:$0xff] }
  0x5f   :  { %1874 = vmatpush3.bf16.msra.mxu0 %v1871_v3  ;;  %1878 = vmatpush3.bf16.msra.mxu1 %v1875_v6  ;;  %v108_v18 = vld [vmem:[#allocation8 + $0x18] sm:$0xff]  ;;  %v2333_v19 = vpack.c.bf16 %v112_v16, %v111_v15  ;;  %v286_v22 = vld [vmem:[%s2504_s1] sm:$0x3] }
  0x60   :  { %1879 = vmatprep.subr.bf16.mxu0 %v2176_v13  ;;  %1885 = vmatprep.subr.bf16.mxu1 %v2176_v13  ;;  %v2337_v20 = vpack.c.bf16 %v108_v18, %v107_v17  ;;  %v1571_v23 = vld [vmem:[%s2509_s6] ss:$0 sm:$0xff]  ;;  %s2179_s6 = smov [#allocation11]  }
  0x61   :  { %v1574_v24 = vld [vmem:[%s2510_s7] ss:$0 sm:$0xff]  ;;  %s1543_s7 = sshll.u32 %s2179_s6, 4  ;;  %s1544_s7 = int_to_ptr.vmem [resolvable:$true] %s1543_s7 }
  0x62   :  { %1686 = vmatmul.mubr.msk.f32.vlgmr.msra.gmra.mrb[0].mxu0 %vm122_vm0, %v114_v11  ;;  %1693 = vmatmul.mubr.msk.f32.vlgmr.msra.gmra.mrb[0].mxu1 %vm122_vm0, %v114_v11  ;;  %s2115_s29 = scalar_lea.vmem %s1544_s7, 256  ;;  %p2120_p13 = scmp.lt.s32.totalorder %s1544_s7, %s1544_s7 }
  0x63   :  { %1881 = vmatpush3.bf16.msra.mxu0 %v2324_v12  ;;  %1887 = vmatpush3.bf16.msra.mxu1 %v2327_v14  ;;  %p2116_p12 = scmp.ne.s32.totalorder %s1544_s7, %s2115_s29  ;;  %p2121_p0 = scmp.lt.s32.totalorder %s2115_s29, %s2115_s29 }
  0x64   :  { %1882 = vmatprep.subr.bf16.mxu0 %v2176_v13  ;;  %1888 = vmatprep.subr.bf16.mxu1 %v2176_v13 }
  0x65   :  { %1703 = vmatprep.mubr.msk.f32.mxu0 %vm2177_vm1, %v2178_v21  ;;  %1714 = vmatprep.mubr.msk.f32.mxu1 %vm2177_vm1, %v2178_v21  ;;  %p2122_p1 = por %p2121_p0, %p2120_p13 }
  0x67   :  { %1884 = vmatpush3.bf16.msra.mxu0 %v2333_v19  ;;  %1890 = vmatpush3.bf16.msra.mxu1 %v2337_v20  ;;  %p2123_p2 = pnand %p2122_p1, %p2116_p12 }
  0x68   :  { %1891 = vmatprep.subr.bf16.mxu0 %v2176_v13  ;;  %1897 = vmatprep.subr.bf16.mxu1 %v2176_v13 }
  0x6a   :  { %1704 = vmatmul.mubr.msk.f32.vlgmr.msra.gmra.mrb[2].mxu0 %vm287_vm2, %v286_v22  ;;  %1715 = vmatmul.mubr.msk.f32.vlgmr.msra.gmra.mrb[2].mxu1 %vm287_vm2, %v286_v22 }
  0x6b   :  { %1893 = vmatpush3.bf16.msra.mxu0 %v2324_v12  ;;  %1899 = vmatpush3.bf16.msra.mxu1 %v2327_v14 }
  0x6c   :  { %1894 = vmatprep.subr.bf16.mxu0 %v2176_v13  ;;  %1900 = vmatprep.subr.bf16.mxu1 %v2176_v13 }
  0x6d   :  { %1725 = vmatprep.mubr.msk.f32.mxu0 %vm2177_vm1, %v2178_v21  ;;  %1736 = vmatprep.mubr.msk.f32.mxu1 %vm2177_vm1, %v2178_v21 }
  0x6f   :  { %1896 = vmatpush3.bf16.msra.mxu0 %v2333_v19  ;;  %1902 = vmatpush3.bf16.msra.mxu1 %v2337_v20 }
  0x70   :  { %1903 = vmatprep.subr.bf16.mxu0 %v2176_v13  ;;  %1909 = vmatprep.subr.bf16.mxu1 %v2176_v13 }
 0x135   :  { %v1687_v25 = vpop.f32.mrb[0].mxu0  ;;  %v1694_v26 = vpop.f32.mrb[0].mxu1 }
 0x136   :  { %v2371_v27 = vadd.f32 %v1687_v25, %v1571_v23  ;;  %v195_v28 = vpop.f32.mrb[1].mxu0  ;;  %v2373_v29 = vadd.f32 %v1694_v26, %v1574_v24  ;;  %v277_v30 = vpop.f32.mrb[1].mxu1 }
 0x137   :  { %v2375_v31 = vadd.f32 %v1571_v23, %v195_v28  ;;  %v2377_v32 = vadd.f32 %v1574_v24, %v277_v30 }
 0x13d   :  { %v357_v33 = vpop.f32.mrb[2].mxu0  ;;  %v429_v35 = vpop.f32.mrb[2].mxu1 }
 0x13e   :  { %v361_v34 = vadd.f32 %v357_v33, %v2377_v32  ;;  %v1705_v36 = vpop.f32.mrb[3].mxu0  ;;  %v433_v37 = vadd.f32 %v429_v35, %v2375_v31  ;;  %v1716_v38 = vpop.f32.mrb[3].mxu1 }
 0x140   :  { %362 = vst [vmem:[#allocation11] sm:$0x3] %v361_v34  ;;  %v434_v39 = vmul.f32 0.5, %v433_v37 }
 0x142   :  { %1989 = vtanh.f32 %v434_v39 }
 0x14c   :  { %v1990_v40 = vpop.eup %1989 }
 0x14d   :  { %v436_v41 = vmul.f32 0.5, %v1990_v40 }
 0x14f   :  { %v437_v42 = vadd.f32 0.5, %v436_v41 }
 0x151   :  { %1726 = vmatmul.mubr.msk.f32.vlgmr.msra.gmra.mrb[4].mxu0 %vm287_vm2, %v437_v42  ;;  %1737 = vmatmul.mubr.msk.f32.vlgmr.msra.gmra.mrb[4].mxu1 %vm287_vm2, %v437_v42 }
 0x152   :  { %1905 = vmatpush3.bf16.msra.mxu0 %v2324_v12  ;;  %1911 = vmatpush3.bf16.msra.mxu1 %v2327_v14 }
 0x153   :  { %1906 = vmatprep.subr.bf16.mxu0 %v2176_v13  ;;  %1912 = vmatprep.subr.bf16.mxu1 %v2176_v13 }
 0x154   :  { %1747 = vmatprep.mubr.msk.f32.mxu0 %vm2177_vm1, %v2178_v21  ;;  %1758 = vmatprep.mubr.msk.f32.mxu1 %vm2177_vm1, %v2178_v21 }
 0x156   :  { %1908 = vmatpush3.bf16.msra.mxu0 %v2333_v19  ;;  %1914 = vmatpush3.bf16.msra.mxu1 %v2337_v20 }
 0x157   :  { %1915 = vmatprep.subr.bf16.mxu0 %v2176_v13  ;;  %1921 = vmatprep.subr.bf16.mxu1 %v2176_v13 }
 0x224   :  { %v507_v43 = vpop.f32.mrb[4].mxu0  ;;  %v583_v44 = vpop.f32.mrb[4].mxu1 }
 0x225   :  { %v512_v45 = vrot.slane %v507_v43, 6  ;;  %v588_v46 = vrot.slane %v583_v44, 6  ;;  %v1727_v47 = vpop.f32.mrb[5].mxu0  ;;  %v1738_v48 = vpop.f32.mrb[5].mxu1 }
 0x227   :  { %v514_v49 = vadd.f32 %v512_v45, %v2377_v32  ;;  %v590_v50 = vadd.f32 %v588_v46, %v2375_v31 }
 0x229   :  { %516 = vst [vmem:[#allocation11] sm:$0xc] %v514_v49  ;;  %v591_v51 = vmul.f32 0.5, %v590_v50 }
 0x22b   :  { %1991 = vtanh.f32 %v591_v51 }
 0x235   :  { %v1992_v52 = vpop.eup %1991 }
 0x236   :  { %v593_v53 = vmul.f32 0.5, %v1992_v52 }
 0x238   :  { %v594_v54 = vadd.f32 0.5, %v593_v53 }
 0x23a   :  { %v596_v55 = vrot.slane %v594_v54, 2 }
 0x23c   :  { %1748 = vmatmul.mubr.msk.f32.vlgmr.msra.gmra.mrb[6].mxu0 %vm287_vm2, %v596_v55  ;;  %1759 = vmatmul.mubr.msk.f32.vlgmr.msra.gmra.mrb[6].mxu1 %vm287_vm2, %v596_v55 }
 0x23d   :  { %1917 = vmatpush3.bf16.msra.mxu0 %v2324_v12  ;;  %1923 = vmatpush3.bf16.msra.mxu1 %v2327_v14 }
 0x23e   :  { %1918 = vmatprep.subr.bf16.mxu0 %v2176_v13  ;;  %1924 = vmatprep.subr.bf16.mxu1 %v2176_v13 }
 0x23f   :  { %1769 = vmatprep.mubr.msk.f32.mxu0 %vm2177_vm1, %v2178_v21  ;;  %1780 = vmatprep.mubr.msk.f32.mxu1 %vm2177_vm1, %v2178_v21 }
 0x241   :  { %1920 = vmatpush3.bf16.msra.mxu0 %v2333_v19  ;;  %1926 = vmatpush3.bf16.msra.mxu1 %v2337_v20 }
 0x242   :  { %1927 = vmatprep.subr.bf16.mxu0 %v2176_v13  ;;  %1933 = vmatprep.subr.bf16.mxu1 %v2176_v13 }
 0x30f   :  { %v665_v56 = vpop.f32.mrb[6].mxu0  ;;  %v741_v57 = vpop.f32.mrb[6].mxu1 }
 0x310   :  { %v670_v58 = vrot.slane %v665_v56, 4  ;;  %v746_v59 = vrot.slane %v741_v57, 4  ;;  %v1749_v60 = vpop.f32.mrb[7].mxu0  ;;  %v1760_v61 = vpop.f32.mrb[7].mxu1 }
 0x312   :  { %v672_v62 = vadd.f32 %v670_v58, %v2377_v32  ;;  %v748_v63 = vadd.f32 %v746_v59, %v2375_v31 }
 0x314   :  { %674 = vst [vmem:[#allocation11] sm:$0x30] %v672_v62  ;;  %v749_v0 = vmul.f32 0.5, %v748_v63 }
 0x316   :  { %1993 = vtanh.f32 %v749_v0 }
 0x320   :  { %v1994_v1 = vpop.eup %1993 }
 0x321   :  { %v751_v2 = vmul.f32 0.5, %v1994_v1 }
 0x323   :  { %v752_v3 = vadd.f32 0.5, %v751_v2 }
 0x325   :  { %v754_v4 = vrot.slane %v752_v3, 4 }
 0x327   :  { %1770 = vmatmul.mubr.msk.f32.vlgmr.msra.gmra.mrb[8].mxu0 %vm287_vm2, %v754_v4  ;;  %1781 = vmatmul.mubr.msk.f32.vlgmr.msra.gmra.mrb[8].mxu1 %vm287_vm2, %v754_v4 }
 0x328   :  { %1929 = vmatpush3.bf16.msra.mxu0 %v2324_v12  ;;  %1935 = vmatpush3.bf16.msra.mxu1 %v2327_v14 }
 0x329   :  { %1930 = vmatprep.subr.bf16.mxu0 %v2176_v13  ;;  %1936 = vmatprep.subr.bf16.mxu1 %v2176_v13 }
 0x32a   :  { %1791 = vmatprep.mubr.msk.f32.mxu0 %vm2177_vm1, %v2178_v21  ;;  %1802 = vmatprep.mubr.msk.f32.mxu1 %vm2177_vm1, %v2178_v21 }
 0x32c   :  { %1932 = vmatpush3.bf16.msra.mxu0 %v2333_v19  ;;  %1938 = vmatpush3.bf16.msra.mxu1 %v2337_v20 }
 0x32d   :  { %1939 = vmatprep.subr.bf16.mxu0 %v2176_v13  ;;  %1945 = vmatprep.subr.bf16.mxu1 %v2176_v13 }
 0x3fa   :  { %v823_v5 = vpop.f32.mrb[8].mxu0  ;;  %v899_v6 = vpop.f32.mrb[8].mxu1 }
 0x3fb   :  { %v828_v7 = vrot.slane %v823_v5, 2  ;;  %v904_v8 = vrot.slane %v899_v6, 2  ;;  %v1771_v9 = vpop.f32.mrb[9].mxu0  ;;  %v1782_v10 = vpop.f32.mrb[9].mxu1 }
 0x3fd   :  { %v830_v11 = vadd.f32 %v828_v7, %v2377_v32  ;;  %v906_v15 = vadd.f32 %v904_v8, %v2375_v31 }
 0x3ff   :  { %832 = vst [vmem:[#allocation11] sm:$0xc0] %v830_v11  ;;  %v907_v16 = vmul.f32 0.5, %v906_v15 }
 0x401   :  { %1995 = vtanh.f32 %v907_v16 }
 0x40b   :  { %v1996_v17 = vpop.eup %1995 }
 0x40c   :  { %v909_v18 = vmul.f32 0.5, %v1996_v17 }
 0x40e   :  { %v910_v22 = vadd.f32 0.5, %v909_v18 }
 0x410   :  { %v912_v23 = vrot.slane %v910_v22, 6 }
 0x412   :  { %1792 = vmatmul.mubr.msk.f32.vlgmr.msra.gmra.mrb[10].mxu0 %vm287_vm2, %v912_v23  ;;  %1803 = vmatmul.mubr.msk.f32.vlgmr.msra.gmra.mrb[10].mxu1 %vm287_vm2, %v912_v23 }
 0x413   :  { %1941 = vmatpush3.bf16.msra.mxu0 %v2324_v12  ;;  %1947 = vmatpush3.bf16.msra.mxu1 %v2327_v14 }
 0x414   :  { %1942 = vmatprep.subr.bf16.mxu0 %v2176_v13  ;;  %1948 = vmatprep.subr.bf16.mxu1 %v2176_v13 }
 0x415   :  { %1813 = vmatprep.mubr.msk.f32.mxu0 %vm2177_vm1, %v2178_v21  ;;  %1824 = vmatprep.mubr.msk.f32.mxu1 %vm2177_vm1, %v2178_v21 }
 0x417   :  { %1944 = vmatpush3.bf16.msra.mxu0 %v2333_v19  ;;  %1950 = vmatpush3.bf16.msra.mxu1 %v2337_v20 }
 0x418   :  { %1951 = vmatprep.subr.bf16.mxu0 %v2176_v13  ;;  %1957 = vmatprep.subr.bf16.mxu1 %v2176_v13 }
 0x4e5   :  { %v981_v24 = vpop.f32.mrb[10].mxu0  ;;  %v1054_v25 = vpop.f32.mrb[10].mxu1 }
 0x4e6   :  { %v985_v26 = vadd.f32 %v981_v24, %v2373_v29  ;;  %v1058_v28 = vadd.f32 %v1054_v25, %v2371_v27  ;;  %v1793_v30 = vpop.f32.mrb[11].mxu0  ;;  %v1804_v31 = vpop.f32.mrb[11].mxu1 }
 0x4e8   :  { %987 = vst [vmem:[#allocation11 + $0x8] sm:$0x3] %v985_v26  ;;  %v1059_v32 = vmul.f32 0.5, %v1058_v28 }
 0x4ea   :  { %1997 = vtanh.f32 %v1059_v32 }
 0x4f4   :  { %v1998_v33 = vpop.eup %1997 }
 0x4f5   :  { %v1061_v34 = vmul.f32 0.5, %v1998_v33 }
 0x4f7   :  { %v1062_v35 = vadd.f32 0.5, %v1061_v34 }
 0x4f9   :  { %1814 = vmatmul.mubr.msk.f32.vlgmr.msra.gmra.mrb[12].mxu0 %vm287_vm2, %v1062_v35  ;;  %1825 = vmatmul.mubr.msk.f32.vlgmr.msra.gmra.mrb[12].mxu1 %vm287_vm2, %v1062_v35 }
 0x4fa   :  { %1953 = vmatpush3.bf16.msra.mxu0 %v2324_v12  ;;  %1959 = vmatpush3.bf16.msra.mxu1 %v2327_v14 }
 0x4fb   :  { %1954 = vmatprep.subr.bf16.mxu0 %v2176_v13  ;;  %1960 = vmatprep.subr.bf16.mxu1 %v2176_v13 }
 0x4fc   :  { %1835 = vmatprep.mubr.msk.f32.mxu0 %vm2177_vm1, %v2178_v21  ;;  %1846 = vmatprep.mubr.msk.f32.mxu1 %vm2177_vm1, %v2178_v21 }
 0x4fe   :  { %1956 = vmatpush3.bf16.msra.mxu0 %v2333_v19  ;;  %1962 = vmatpush3.bf16.msra.mxu1 %v2337_v20 }
 0x4ff   :  { %1963 = vmatprep.subr.bf16.mxu0 %v2176_v13  ;;  %1969 = vmatprep.subr.bf16.mxu1 %v2176_v13 }
 0x5cc   :  { %v1132_v36 = vpop.f32.mrb[12].mxu0  ;;  %v1208_v37 = vpop.f32.mrb[12].mxu1 }
 0x5cd   :  { %v1137_v38 = vrot.slane %v1132_v36, 6  ;;  %v1213_v39 = vrot.slane %v1208_v37, 6  ;;  %v1815_v40 = vpop.f32.mrb[13].mxu0  ;;  %v1826_v41 = vpop.f32.mrb[13].mxu1 }
 0x5cf   :  { %v1139_v42 = vadd.f32 %v1137_v38, %v2373_v29  ;;  %v1215_v43 = vadd.f32 %v1213_v39, %v2371_v27 }
 0x5d1   :  { %1141 = vst [vmem:[#allocation11 + $0x8] sm:$0xc] %v1139_v42  ;;  %v1216_v44 = vmul.f32 0.5, %v1215_v43 }
 0x5d3   :  { %1999 = vtanh.f32 %v1216_v44 }
 0x5dd   :  { %v2000_v45 = vpop.eup %1999 }
 0x5de   :  { %v1218_v46 = vmul.f32 0.5, %v2000_v45 }
 0x5e0   :  { %v1219_v47 = vadd.f32 0.5, %v1218_v46 }
 0x5e2   :  { %v1221_v48 = vrot.slane %v1219_v47, 2 }
 0x5e4   :  { %1836 = vmatmul.mubr.msk.f32.vlgmr.msra.gmra.mrb[14].mxu0 %vm287_vm2, %v1221_v48  ;;  %1847 = vmatmul.mubr.msk.f32.vlgmr.msra.gmra.mrb[14].mxu1 %vm287_vm2, %v1221_v48 }
 0x5e5   :  { %1965 = vmatpush3.bf16.msra.mxu0 %v2324_v12  ;;  %1971 = vmatpush3.bf16.msra.mxu1 %v2327_v14 }
 0x5e6   :  { %1966 = vmatprep.subr.bf16.mxu0 %v2176_v13  ;;  %1972 = vmatprep.subr.bf16.mxu1 %v2176_v13 }
 0x5e7   :  { %1857 = vmatprep.mubr.msk.f32.mxu0 %vm2177_vm1, %v2178_v21  ;;  %1868 = vmatprep.mubr.msk.f32.mxu1 %vm2177_vm1, %v2178_v21 }
 0x5e9   :  { %1968 = vmatpush3.bf16.msra.mxu0 %v2333_v19  ;;  %1974 = vmatpush3.bf16.msra.mxu1 %v2337_v20 }
 0x6b7   :  { %v1290_v49 = vpop.f32.mrb[14].mxu0  ;;  %v1366_v50 = vpop.f32.mrb[14].mxu1 }
 0x6b8   :  { %v1295_v51 = vrot.slane %v1290_v49, 4  ;;  %v1371_v12 = vrot.slane %v1366_v50, 4  ;;  %v1837_v52 = vpop.f32.mrb[15].mxu0  ;;  %v1848_v14 = vpop.f32.mrb[15].mxu1 }
 0x6ba   :  { %v1297_v53 = vadd.f32 %v1295_v51, %v2373_v29  ;;  %v1373_v13 = vadd.f32 %v1371_v12, %v2371_v27 }
 0x6bc   :  { %1299 = vst [vmem:[#allocation11 + $0x8] sm:$0x30] %v1297_v53  ;;  %v1374_v54 = vmul.f32 0.5, %v1373_v13 }
 0x6be   :  { %2001 = vtanh.f32 %v1374_v54 }
 0x6c8   :  { %v2002_v55 = vpop.eup %2001 }
 0x6c9   :  { %v1376_v56 = vmul.f32 0.5, %v2002_v55 }
 0x6cb   :  { %v1377_v21 = vadd.f32 0.5, %v1376_v56 }
 0x6cd   :  { %v1379_v57 = vrot.slane %v1377_v21, 4 }
 0x6cf   :  { %1858 = vmatmul.mubr.msk.f32.vlgmr.msra.gmra.mrb[16].mxu0 %vm287_vm2, %v1379_v57  ;;  %1869 = vmatmul.mubr.msk.f32.vlgmr.msra.gmra.mrb[16].mxu1 %vm287_vm2, %v1379_v57 }
 0x7a2   :  { %v1448_v19 = vpop.f32.mrb[16].mxu0  ;;  %v1524_v20 = vpop.f32.mrb[16].mxu1 }
 0x7a3   :  { %v1453_v58 = vrot.slane %v1448_v19, 2  ;;  %v1529_v59 = vrot.slane %v1524_v20, 2  ;;  %v1859_v60 = vpop.f32.mrb[17].mxu0  ;;  %v1870_v61 = vpop.f32.mrb[17].mxu1 }
 0x7a5   :  { %v1455_v62 = vadd.f32 %v1453_v58, %v2373_v29  ;;  %v1531_v63 = vadd.f32 %v1529_v59, %v2371_v27 }
 0x7a7   :  { %1457 = vst [vmem:[#allocation11 + $0x8] sm:$0xc0] %v1455_v62  ;;  %v1532_v0 = vmul.f32 0.5, %v1531_v63 }
 0x7a8   :  { %2126 = shalt.err (!%p2123_p2)
}
 0x7a9   :  { %s2127_s13 = scalar_lea.hbm %s2511_s8, 256 }
 0x7aa   :  { %p2128_p3 = scmp.ne.s32.totalorder %s2511_s8, %s2127_s13  ;;  %p2131_p4 = scmp.lt.u32.totalorder %s2127_s13, %s2511_s8 }
 0x7ac   :  { %p2133_p5 = pnand %p2131_p4, %p2128_p3 }
 0x7ae   :  { %2136 = shalt.err (!%p2133_p5)
}
 0x7af   :  { %s2180_s15 = smov 32   ;;  %s2181_s16 = smov 2   ;;  %2003 = vtanh.f32 %v1532_v0  ;;  %vm1536_vm3 = vcmask 261126  }
 0x7b0   :  { %1549 = dma.vmem_to_hbm [thread:$0]  %s1544_s7, 256, %s2511_s8, [#allocation4], %s2180_s15, %s2180_s15, %s2181_s16  }
 0x7b1   :  { %s2182_s20 = smov [#allocation12]  }
 0x7b2   :  { %s1556_s23 = sshll.u32 %s2182_s20, 4  ;;  %s1557_s23 = int_to_ptr.vmem [resolvable:$true] %s1556_s23 }
 0x7b3   :  { %s2137_s24 = scalar_lea.vmem %s1557_s23, 32  ;;  %p2142_p7 = scmp.lt.s32.totalorder %s1557_s23, %s1557_s23 }
 0x7b4   :  { %p2138_p6 = scmp.ne.s32.totalorder %s1557_s23, %s2137_s24  ;;  %p2143_p8 = scmp.lt.s32.totalorder %s2137_s24, %s2137_s24 }
 0x7b6   :  { %p2144_p9 = por %p2143_p8, %p2142_p7 }
 0x7b8   :  { %p2145_p10 = pnand %p2144_p9, %p2138_p6 }
 0x7b9   :  { %v2004_v27 = vpop.eup %2003 }
 0x7ba   :  { %v1534_v29 = vmul.f32 0.5, %v2004_v27 }
 0x7bc   :  { %v1535_v1 = vadd.f32 0.5, %v1534_v29 }
 0x7be   :  { %1537 = vst.msk [vmem:[#allocation12 - $0x6] sm:$0xc0] %vm1536_vm3, %v1535_v1 }
 0x7bf   :  { %2148 = shalt.err (!%p2145_p10)
}
 0x7c0   :  { %s2149_s8 = scalar_lea.hbm %s2512_s9, 32 }
 0x7c1   :  { %p2150_p11 = scmp.ne.s32.totalorder %s2512_s9, %s2149_s8  ;;  %p2153_p12 = scmp.lt.u32.totalorder %s2149_s8, %s2512_s9 }
 0x7c3   :  { %p2155_p13 = pnand %p2153_p12, %p2150_p11 }
 0x7c5   :  { %2158 = shalt.err (!%p2155_p13)
}
 0x7c6   :  { %1559 = dma.vmem_to_hbm [thread:$0]  %s1557_s23, 32, %s2512_s9, [#allocation13]  }
 0x7c7   :  { %2165 = dma.done.wait [#allocation4], 256  }
 0x7c8   :  { %2166 = vsyncadd [#allocation4], 4294967040 }
 0x7c9   :  { %2167 = dma.done.wait [#allocation13], 32  }
 0x7ca   :  { %2168 = vsyncadd [#allocation13], 4294967264 }
 0x7cb   :  { %1566 = vsyncpa [#allocation3], 1 }
 0x7cc   :  { %1567 = vsyncpa [#allocation6], 1 }
 0x7cd   :  { %1568 = vsyncpa [#allocation9], 1 }
 0x7ce   :  { %1569 = vsyncpa [#allocation4], 1 }
 0x7cf   :  { %1570 = vsyncpa [#allocation13], 1 }

</bundles_post_ra>
